<compile_context>
chip_gen: v5e
topology: v5e:2x2
jax: 0.10.0
libtpu: 0.0.40
codegen_flags: <defaults>
</compile_context>

<pallas_src>
import jax
import jax.numpy as jnp
from jax.experimental import pallas as pl
from jax.experimental.pallas import tpu as pltpu


def linear_kernel(x_ref, w_ref, b_ref, o_ref):
    # x_ref: (tm, K) f32   w_ref: (K, Np) bf16   b_ref: (1, Np) f32   o_ref: (tm, Np) f32
    acc = jnp.dot(
        x_ref[...].astype(jnp.bfloat16),   # native bf16 MXU path
        w_ref[...],
        preferred_element_type=jnp.float32,  # f32 accumulation
    )
    o_ref[...] = (acc + b_ref[...]).astype(o_ref.dtype)


def _round_up(x, m):
    return ((x + m - 1) // m) * m


def prepare_linear_params(weight, bias):
    """One-time parameter prep (done at load time, NOT per call).

    weight: (num_class, 512) f32, bias: (num_class,) f32
    Returns (w_prepared (K, Np) bf16, b_prepared (1, Np) f32).
    """
    num_class, K = weight.shape
    Np = _round_up(num_class, 128)           # lane-dense output / RHS tile
    w_t = weight.T.astype(jnp.bfloat16)       # (K, num_class), pre-transposed
    b2d = bias.astype(jnp.float32).reshape(1, num_class)
    if Np != num_class:
        w_t = jnp.pad(w_t, ((0, 0), (0, Np - num_class)))
        b2d = jnp.pad(b2d, ((0, 0), (0, Np - num_class)))
    return w_t, b2d


_TM = 256  # M tile for the large-batch grid path (matches v7x 256x256 MXU)


def my_resnet_forward(inputs, w_prepared, b_prepared, num_class):
    """inputs: (B, C, H, W); w_prepared: (K, Np) bf16; b_prepared: (1, Np) f32."""
    B = inputs.shape[0]
    x_flat = inputs.reshape(B, -1).astype(jnp.float32)   # mirrors .view(B, -1)
    K = x_flat.shape[1]
    Kw, Np = w_prepared.shape
    assert K == Kw, f"flattened input dim {K} != prepared weight dim {Kw}"

    cost = pl.CostEstimate(
        flops=2 * B * K * Np,
        transcendentals=0,
        bytes_accessed=B * K * 4 + K * Np * 2 + Np * 4 + B * Np * 4,
    )

    if B >= 2 * _TM and B % _TM == 0:
        # Large-batch serving path: parallel M grid (uses both v7x TensorCores,
        # keeps per-step VMEM well under the v7x 64 MiB budget).
        out = pl.pallas_call(
            linear_kernel,
            out_shape=jax.ShapeDtypeStruct((B, Np), jnp.float32),
            grid=(B // _TM,),
            in_specs=[
                pl.BlockSpec((_TM, K), lambda i: (i, 0)),
                pl.BlockSpec((K, Np), lambda i: (0, 0)),   # weight stays resident
                pl.BlockSpec((1, Np), lambda i: (0, 0)),
            ],
            out_specs=pl.BlockSpec((_TM, Np), lambda i: (i, 0)),
            compiler_params=pltpu.CompilerParams(
                dimension_semantics=("parallel",)),
            cost_estimate=cost,
        )(x_flat, w_prepared, b_prepared)
    else:
        # Small batch: single VMEM-resident full block, no grid, no padding.
        out = pl.pallas_call(
            linear_kernel,
            out_shape=jax.ShapeDtypeStruct((B, Np), jnp.float32),
            in_specs=[
                pl.BlockSpec(memory_space=pltpu.MemorySpace.VMEM),  # x (B, K)
                pl.BlockSpec(memory_space=pltpu.MemorySpace.VMEM),  # w (K, Np)
                pl.BlockSpec(memory_space=pltpu.MemorySpace.VMEM),  # b (1, Np)
            ],
            out_specs=pl.BlockSpec(memory_space=pltpu.MemorySpace.VMEM),
            cost_estimate=cost,
        )(x_flat, w_prepared, b_prepared)

    if Np != num_class:
        out = out[:, :num_class]   # cheap N slice, only when num_class % 128 != 0
    return out


if __name__ == "__main__":
    key = jax.random.PRNGKey(0)
    k_x, k_w, k_b = jax.random.split(key, 3)

    batch = 2
    in_features = 512          # fixed by nn.Linear(512, num_class)
    num_class = 128            # small synthetic class count

    # Input mimics the (B, 512, 1, 1) tensor the ResNet avgpool would yield.
    x = jax.random.normal(k_x, (batch, in_features, 1, 1), dtype=jnp.float32)

    # Deterministic synthetic parameters for trained_features = Linear(512, num_class).
    weight = jax.random.normal(k_w, (num_class, in_features), dtype=jnp.float32) * 0.02
    bias = jax.random.normal(k_b, (num_class,), dtype=jnp.float32) * 0.02

    # One-time parameter preparation (transpose + lane pad + bf16 cast).
    w_prep, b_prep = prepare_linear_params(weight, bias)

    out = my_resnet_forward(x, w_prep, b_prep, num_class)
    out = jax.block_until_ready(out)

    # Reference (f32, same math as PyTorch Linear). Tolerance relaxed for the
    # bf16 weight/activation cast inside the kernel.
    ref = x.reshape(batch, -1) @ weight.T + bias
    assert out.shape == (batch, num_class)
    assert jnp.allclose(out, ref, atol=2e-2, rtol=2e-2), float(
        jnp.max(jnp.abs(out - ref)))

    # Also exercise the large-batch parallel-grid path once (v7x two-core path).
    big_batch = 512
    xb = jax.random.normal(k_x, (big_batch, in_features, 1, 1), dtype=jnp.float32)
    outb = jax.block_until_ready(my_resnet_forward(xb, w_prep, b_prep, num_class))
    refb = xb.reshape(big_batch, -1) @ weight.T + bias
    assert outb.shape == (big_batch, num_class)
    assert jnp.allclose(outb, refb, atol=2e-2, rtol=2e-2), float(
        jnp.max(jnp.abs(outb - refb)))

    # TODO(synk): self.features (ResNet-18 conv backbone) is constructed in
    # __init__ but never invoked in forward(), so it is intentionally omitted.
    print("KERNEL_OK")
</pallas_src>

<mosaic_0001>
module attributes {stable_mosaic.version = 11 : i64} {
  func.func @linear_kernel(%arg0: memref<2x512xf32, #tpu.memory_space<vmem>>, %arg1: memref<512x128xbf16, #tpu.memory_space<vmem>>, %arg2: memref<1x128xf32, #tpu.memory_space<vmem>>, %arg3: memref<2x128xf32, #tpu.memory_space<vmem>>) attributes {dimension_semantics = [], scalar_prefetch = 0 : i64, scratch_operands = 0 : i64, tpu.core_type = #tpu.core_type<tc>} {
    %c0 = arith.constant 0 : index
    %c0_0 = arith.constant 0 : index
    %0 = vector.load %arg0[%c0, %c0_0] : memref<2x512xf32, #tpu.memory_space<vmem>>, vector<2x512xf32>
    %1 = arith.truncf %0 : vector<2x512xf32> to vector<2x512xbf16>
    %c0_1 = arith.constant 0 : index
    %c0_2 = arith.constant 0 : index
    %2 = vector.load %arg1[%c0_1, %c0_2] : memref<512x128xbf16, #tpu.memory_space<vmem>>, vector<512x128xbf16>
    %cst = arith.constant dense<0.000000e+00> : vector<2x128xf32>
    %3 = tpu.matmul %1, %2, %cst {dimension_numbers = #tpu.dot_dimension_numbers<[1], [0], [0], [1], [0, 0, 1, 1], [], []>} : vector<2x512xbf16>, vector<512x128xbf16>, vector<2x128xf32> -> vector<2x128xf32>
    %c0_3 = arith.constant 0 : index
    %c0_4 = arith.constant 0 : index
    %4 = vector.load %arg2[%c0_3, %c0_4] : memref<1x128xf32, #tpu.memory_space<vmem>>, vector<1x128xf32>
    %5 = vector.broadcast %4 : vector<1x128xf32> to vector<2x128xf32>
    %6 = arith.addf %3, %5 : vector<2x128xf32>
    %c0_5 = arith.constant 0 : index
    %c0_6 = arith.constant 0 : index
    %7 = vector.load %arg3[%c0_5, %c0_6] : memref<2x128xf32, #tpu.memory_space<vmem>>, vector<2x128xf32>
    tpu.vector_store %arg3[%c0_5, %c0_6], %6 {strides = array<i32>} : memref<2x128xf32, #tpu.memory_space<vmem>>, vector<2x128xf32>,
    return
  }
}

</mosaic_0001>

<bundles_post_ra>
// kernel: tpu_custom_call.1
= control target key start
LH: loop header
LB: loop body
LE: loop exit
PB: predicated region body
PF: predicated region fallthrough
CT: control target
= control target key end

     0   :  { %8 = vsyncpa [#allocation3], 0  ;;  %s672_s0 = inlined_call_operand.hbm [shape: f32[2,512], index: 0, kind: input, shape index: {}]   ;;  %s673_s1 = inlined_call_operand.hbm [shape: bf16[512,128], index: 1, kind: input, shape index: {}]   ;;  %s674_s2 = inlined_call_operand.vmem [shape: f32[1,128], index: 2, kind: input, shape index: {}]   ;;  %s675_s3 = inlined_call_operand.hbm [shape: f32[2,128], index: 3, kind: output, shape index: {}]  }
   0x1   :  { %9 = vsyncpa [#allocation6], 0 }
   0x2   :  { %10 = vsyncpa [#allocation4], 0  ;;  %s16_s14 = sshll.u32 %s672_s0, 4  ;;  %s635_s15 = smov [#allocation2]   ;;  %s17_s14 = int_to_ptr.hbm [resolvable:$true] %s16_s14 }
   0x3   :  { %s18_s16 = sshll.u32 %s635_s15, 4  ;;  %s26_s19 = sshll.u32 %s673_s1, 4  ;;  %s19_s16 = int_to_ptr.vmem [resolvable:$true] %s18_s16  ;;  %s27_s19 = int_to_ptr.hbm [resolvable:$true] %s26_s19 }
   0x4   :  { %21 = dma.hbm_to_vmem [thread:$0]  %s17_s14, 128, %s19_s16, [#allocation3]  }
   0x5   :  { %s636_s20 = smov [#allocation5]   ;;  %s637_s22 = smov 64  }
   0x6   :  { %s28_s21 = sshll.u32 %s636_s20, 4  ;;  %s638_s23 = smov 4   ;;  %s29_s21 = int_to_ptr.vmem [resolvable:$true] %s28_s21 }
   0x7   :  { %34 = dma.hbm_to_vmem [thread:$0]  %s27_s19, 4096, %s29_s21, [#allocation6], %s637_s22, %s637_s22, %s638_s23  }
   0x8   :  { %629 = dma.done.wait [#allocation3], 128  }
   0x9   :  { %630 = vsyncadd [#allocation3], 4294967168 }
   0xa   :  { %631 = dma.done.wait [#allocation6], 4096  }
   0xb   :  { %632 = vsyncadd [#allocation6], 4294963200  ;;  %v526_v0 = vld [vmem:[#allocation5 + $0x38] sm:$0xff]  ;;  %v525_v4 = vld [vmem:[#allocation5 + $0x30] sm:$0xff]  ;;  %s639_s24 = smov [#allocation7]   ;;  %s380_s28 = sshll.u32 %s675_s3, 4  ;;  %s381_s28 = int_to_ptr.hbm [resolvable:$true] %s380_s28 }
   0xc   :  { %v534_v1 = vld [vmem:[#allocation5 + $0x78] sm:$0xff]  ;;  %320 = vmatpush.bf16.msra.mxu0 %v526_v0  ;;  %v533_v5 = vld [vmem:[#allocation5 + $0x70] sm:$0xff]  ;;  %v524_v8 = vld [vmem:[#allocation5 + $0x28] sm:$0xff]  ;;  %s378_s25 = sshll.u32 %s639_s24, 4  ;;  %s379_s25 = int_to_ptr.vmem [resolvable:$true] %s378_s25 }
   0xd   :  { %v542_v2 = vld [vmem:[#allocation5 + $0xb8] sm:$0xff]  ;;  %333 = vmatpush.bf16.msra.mxu1 %v534_v1  ;;  %v541_v6 = vld [vmem:[#allocation5 + $0xb0] sm:$0xff]  ;;  %v532_v9 = vld [vmem:[#allocation5 + $0x68] sm:$0xff] }
   0xe   :  { %v550_v3 = vld [vmem:[#allocation5 + $0xf8] sm:$0xff]  ;;  %346 = vmatpush.bf16.msra.mxu2 %v542_v2  ;;  %v549_v7 = vld [vmem:[#allocation5 + $0xf0] sm:$0xff]  ;;  %v540_v10 = vld [vmem:[#allocation5 + $0xa8] sm:$0xff] }
   0xf   :  { %359 = vmatpush.bf16.msra.mxu3 %v550_v3  ;;  %v548_v11 = vld [vmem:[#allocation5 + $0xe8] sm:$0xff]  ;;  %v523_v12 = vld [vmem:[#allocation5 + $0x20] sm:$0xff]  ;;  %v45_v14 = vld [vmem:[#allocation2] sm:$0xff] }
  0x10   :  { %321 = vmatpush.bf16.msra.mxu0 %v525_v4  ;;  %v531_v13 = vld [vmem:[#allocation5 + $0x60] sm:$0xff]  ;;  %47 = vst [vmem:[#allocation1] ss:$4 sm:$0xff] %v45_v14  ;;  %v522_v17 = vld [vmem:[#allocation5 + $0x18] sm:$0xff]  ;;  %v521_v21 = vld [vmem:[#allocation5 + $0x10] sm:$0xff] }
  0x11   :  { %334 = vmatpush.bf16.msra.mxu1 %v533_v5  ;;  %v539_v15 = vld [vmem:[#allocation5 + $0xa0] sm:$0xff]  ;;  %v530_v18 = vld [vmem:[#allocation5 + $0x58] sm:$0xff]  ;;  %v529_v22 = vld [vmem:[#allocation5 + $0x50] sm:$0xff] }
  0x12   :  { %347 = vmatpush.bf16.msra.mxu2 %v541_v6  ;;  %v547_v16 = vld [vmem:[#allocation5 + $0xe0] sm:$0xff]  ;;  %v538_v19 = vld [vmem:[#allocation5 + $0x98] sm:$0xff]  ;;  %v537_v23 = vld [vmem:[#allocation5 + $0x90] sm:$0xff] }
  0x13   :  { %360 = vmatpush.bf16.msra.mxu3 %v549_v7  ;;  %v546_v20 = vld [vmem:[#allocation5 + $0xd8] sm:$0xff]  ;;  %v545_v24 = vld [vmem:[#allocation5 + $0xd0] sm:$0xff]  ;;  %v520_v25 = vld [vmem:[#allocation5 + $0x8] sm:$0xff] }
  0x14   :  { %322 = vmatpush.bf16.msra.mxu0 %v524_v8  ;;  %v528_v26 = vld [vmem:[#allocation5 + $0x48] sm:$0xff]  ;;  %v519_v29 = vld [vmem:[#allocation5] sm:$0xff]  ;;  %v556_v41 = vld [vmem:[%s674_s2] ss:$0 sm:$0xff] }
  0x15   :  { %335 = vmatpush.bf16.msra.mxu1 %v532_v9  ;;  %v536_v27 = vld [vmem:[#allocation5 + $0x88] sm:$0xff]  ;;  %v527_v30 = vld [vmem:[#allocation5 + $0x40] sm:$0xff] }
  0x16   :  { %348 = vmatpush.bf16.msra.mxu2 %v540_v10  ;;  %v544_v28 = vld [vmem:[#allocation5 + $0xc8] sm:$0xff]  ;;  %v535_v31 = vld [vmem:[#allocation5 + $0x80] sm:$0xff] }
  0x17   :  { %361 = vmatpush.bf16.msra.mxu3 %v548_v11  ;;  %v543_v32 = vld [vmem:[#allocation5 + $0xc0] sm:$0xff]  ;;  %v48_v33 = vld.sshfl [vmem:[#allocation1] sm:$0xff pattern:$0x73625140] }
  0x18   :  { %323 = vmatpush.bf16.msra.mxu0 %v523_v12  ;;  %v49_v34 = vld.sshfl [vmem:[#allocation1 + $0x8] sm:$0xff pattern:$0x73625140]  ;;  %v50_v35 = vld.sshfl [vmem:[#allocation1 + $0x10] sm:$0xff pattern:$0x73625140]  ;;  %v56_v37 = vpack.c.bf16 %v48_v33, %v48_v33 }
  0x19   :  { %336 = vmatpush.bf16.msra.mxu1 %v531_v13  ;;  %v51_v36 = vld.sshfl [vmem:[#allocation1 + $0x18] sm:$0xff pattern:$0x73625140]  ;;  %v57_v38 = vpack.c.bf16 %v49_v34, %v49_v34  ;;  %v58_v39 = vpack.c.bf16 %v50_v35, %v50_v35 }
  0x1a   :  { %349 = vmatpush.bf16.msra.mxu2 %v539_v15  ;;  %v59_v40 = vpack.c.bf16 %v51_v36, %v51_v36 }
  0x1b   :  { %362 = vmatpush.bf16.msra.mxu3 %v547_v16 }
  0x1c   :  { %324 = vmatpush.bf16.msra.mxu0 %v522_v17 }
  0x1d   :  { %337 = vmatpush.bf16.msra.mxu1 %v530_v18 }
  0x1e   :  { %350 = vmatpush.bf16.msra.mxu2 %v538_v19 }
  0x1f   :  { %363 = vmatpush.bf16.msra.mxu3 %v546_v20 }
  0x20   :  { %325 = vmatpush.bf16.msra.mxu0 %v521_v21 }
  0x21   :  { %338 = vmatpush.bf16.msra.mxu1 %v529_v22 }
  0x22   :  { %351 = vmatpush.bf16.msra.mxu2 %v537_v23 }
  0x23   :  { %364 = vmatpush.bf16.msra.mxu3 %v545_v24 }
  0x24   :  { %326 = vmatpush.bf16.msra.mxu0 %v520_v25 }
  0x25   :  { %339 = vmatpush.bf16.msra.mxu1 %v528_v26 }
  0x26   :  { %352 = vmatpush.bf16.msra.mxu2 %v536_v27 }
  0x27   :  { %365 = vmatpush.bf16.msra.mxu3 %v544_v28 }
  0x28   :  { %327 = vmatpush.bf16.msra.mxu0 %v519_v29 }
  0x29   :  { %340 = vmatpush.bf16.msra.mxu1 %v527_v30 }
  0x2a   :  { %353 = vmatpush.bf16.msra.mxu2 %v535_v31 }
  0x2b   :  { %366 = vmatpush.bf16.msra.mxu3 %v543_v32  ;;  %328 = vmatmul.bf16.vlgmr.msra.gmra.mxu0 %v56_v37 }
  0x2c   :  { %341 = vmatmul.bf16.vlgmr.msra.gmra.mxu1 %v57_v38 }
  0x2d   :  { %354 = vmatmul.bf16.vlgmr.msra.gmra.mxu2 %v58_v39 }
  0x2e   :  { %367 = vmatmul.bf16.vlgmr.msra.gmra.mxu3 %v59_v40 }
  0xa8   :  { %v329_v42 = vpop.f32.mrf.mxu0 }
  0xa9   :  { %v342_v43 = vpop.f32.mrf.mxu1  ;;  %v330_v44 = vadd.f32 %v556_v41, %v329_v42 }
  0xab   :  { %v343_v45 = vadd.f32 %v342_v43, %v330_v44 }
  0xb0   :  { %v355_v46 = vpop.f32.mrf.mxu2  ;;  %v331_v49 = vpop.f32.mrf.mxu0 }
  0xb1   :  { %v368_v47 = vpop.f32.mrf.mxu3  ;;  %v356_v48 = vadd.f32 %v355_v46, %v343_v45  ;;  %v344_v50 = vpop.f32.mrf.mxu1 }
  0xb3   :  { %v369_v51 = vadd.f32 %v368_v47, %v356_v48 }
  0xb5   :  { %372 = vst [vmem:[#allocation7] sm:$0x3] %v369_v51 }
  0xb6   :  { %383 = dma.vmem_to_hbm [thread:$0]  %s379_s25, 32, %s381_s28, [#allocation4]  }
  0xb8   :  { %v357_v52 = vpop.f32.mrf.mxu2 }
  0xb9   :  { %v370_v53 = vpop.f32.mrf.mxu3 }
  0xba   :  { %633 = dma.done.wait [#allocation4], 32  }
  0xbb   :  { %634 = vsyncadd [#allocation4], 4294967264 }
  0xbc   :  { %388 = vsyncpa [#allocation3], 1 }
  0xbd   :  { %389 = vsyncpa [#allocation6], 1 }
  0xbe   :  { %390 = vsyncpa [#allocation4], 1 }

</bundles_post_ra>
